<compile_context>
chip_gen: v7x
topology: tpu7x:2x2x1
jax: 0.10.0
libtpu: 0.0.40
codegen_flags: <defaults>
</compile_context>

<pallas_src>
import functools

import jax
import jax.numpy as jnp
from jax.experimental import pallas as pl
from jax.experimental.pallas import tpu as pltpu


def _normalize_kernel(scale_ref, shift_ref, x_ref, o_ref, *, block_rows):
    # scale_ref / shift_ref: (R_pad, 1) f32, fully resident in VMEM.
    # x_ref / o_ref:         (BR, BL) tile of the flattened (N*C, H*W) view.
    row0 = pl.multiple_of(pl.program_id(0) * block_rows, block_rows)
    scale = scale_ref[pl.ds(row0, block_rows), :]
    shift = shift_ref[pl.ds(row0, block_rows), :]
    xf = x_ref[...].astype(jnp.float32)
    o_ref[...] = (xf * scale + shift).astype(o_ref.dtype)


def _pick_block(total, quantum, max_block):
    """Largest tile size for one dim: full dim if small, else a multiple of
    `quantum` (preferring one that divides `total` evenly)."""
    if total <= max_block:
        return total
    b = (max_block // quantum) * quantum
    cand = b
    while cand >= quantum:
        if total % cand == 0:
            return cand
        cand -= quantum
    # Fall back to partial last blocks (handled by Pallas masking).
    return b


def normalize(x, mean, std, *, force_pallas=False):
    """Per-channel normalization of an NCHW tensor via a Pallas TPU kernel."""
    N, C, H, W = x.shape
    dtype = x.dtype
    itemsize = x.dtype.itemsize

    # Fold (x - mean) / std into x * inv_std + (-mean * inv_std), in f32.
    mean_f = jnp.asarray(mean, dtype=jnp.float32)
    std_f = jnp.asarray(std, dtype=jnp.float32)
    inv_std = 1.0 / std_f
    shift = -mean_f * inv_std

    # Fast path: for tiny tensors the fixed pallas_call/pipeline cost dominates.
    if not force_pallas and x.size * itemsize < 256 * 1024:
        out = (x.astype(jnp.float32) * inv_std[None, :, None, None]
               + shift[None, :, None, None])
        return out.astype(dtype)

    R, L = N * C, H * W
    x2 = x.reshape(R, L)  # contiguous, free reshape: lane-dense view

    # ---- Tile selection -----------------------------------------------------
    # Lane axis first and as wide as possible (cap 8192), then rows up to an
    # ~8 MiB per-buffer budget.  Row quantum follows dtype packing:
    # f32 -> 8, bf16/f16 -> 16, int8/fp8 -> 32.
    row_quantum = max(8, 32 // itemsize)
    BL = _pick_block(L, 128, 8192)

    target_tile_bytes = 8 * 1024 * 1024
    row_cap = (target_tile_bytes // (BL * itemsize)) // row_quantum * row_quantum
    row_cap = max(row_quantum, min(row_cap, 1024))
    BR = _pick_block(R, row_quantum, row_cap)

    gr, gl = pl.cdiv(R, BR), pl.cdiv(L, BL)

    # v7x megacore balance: if the row axis collapsed to a single block, make
    # the lane axis present an even number of blocks so both TCs get work.
    if (gr == 1 and gl > 1 and gl % 2 == 1
            and L % BL == 0 and BL % 256 == 0 and BL // 2 >= 1024):
        BL //= 2
        gl = pl.cdiv(L, BL)

    # ---- Per-row parameter columns (kept resident, f32) ---------------------
    # Row r = n*C + c  ->  channel c = r % C.  Zero-pad to a whole number of
    # row blocks so the in-kernel dynamic slice never runs past the array.
    R_pad = gr * BR
    scale_rows = jnp.tile(inv_std, N)
    shift_rows = jnp.tile(shift, N)
    if R_pad > R:
        scale_rows = jnp.pad(scale_rows, (0, R_pad - R))
        shift_rows = jnp.pad(shift_rows, (0, R_pad - R))
    scale_rows = scale_rows.reshape(R_pad, 1)
    shift_rows = shift_rows.reshape(R_pad, 1)

    kernel = functools.partial(_normalize_kernel, block_rows=BR)

    grid_spec = pltpu.PrefetchScalarGridSpec(
        num_scalar_prefetch=0,
        grid=(gr, gl),
        in_specs=[
            pl.BlockSpec((R_pad, 1), lambda r, l: (0, 0)),   # scale: resident
            pl.BlockSpec((R_pad, 1), lambda r, l: (0, 0)),   # shift: resident
            pl.BlockSpec((BR, BL), lambda r, l: (r, l)),     # x tile
        ],
        out_specs=pl.BlockSpec((BR, BL), lambda r, l: (r, l)),
    )

    cost = pl.CostEstimate(
        flops=2 * R * L,
        transcendentals=0,
        bytes_accessed=2 * R * L * itemsize + 2 * R_pad * 4,
    )

    out2 = pl.pallas_call(
        kernel,
        out_shape=jax.ShapeDtypeStruct((R, L), dtype),
        grid_spec=grid_spec,
        compiler_params=pltpu.CompilerParams(
            dimension_semantics=("parallel", "parallel"),
            vmem_limit_bytes=48 * 1024 * 1024,
        ),
        cost_estimate=cost,
    )(scale_rows, shift_rows, x2)

    return out2.reshape(N, C, H, W)


if __name__ == "__main__":
    key = jax.random.PRNGKey(0)
    N, C, H, W = 2, 4, 16, 16

    x = jax.random.normal(key, (N, C, H, W), dtype=jnp.float32)

    # Deterministic per-channel "parameters" (the module's __init__ just stores
    # whatever mean/std it is given).
    mean = jnp.array([0.485, 0.456, 0.406, 0.5], dtype=jnp.float32)
    std = jnp.array([0.229, 0.224, 0.225, 0.25], dtype=jnp.float32)

    # force_pallas=True so the Pallas kernel (not the tiny-input fast path)
    # is exercised at this small test shape.
    out = normalize(x, mean, std, force_pallas=True)
    out = jax.block_until_ready(out)

    # Reference check (plain JAX, mirrors the PyTorch loop semantics).
    ref = (x - mean[None, :, None, None]) / std[None, :, None, None]
    assert out.shape == x.shape and out.dtype == x.dtype
    assert jnp.allclose(out, ref, atol=1e-5, rtol=1e-5)

    print("KERNEL_OK")
</pallas_src>

<mosaic_0001>
module attributes {stable_mosaic.version = 11 : i64} {
  func.func @_normalize_kernel(%arg0: i32, %arg1: i32, %arg2: memref<8x1xf32, #tpu.memory_space<vmem>>, %arg3: memref<8x1xf32, #tpu.memory_space<vmem>>, %arg4: memref<8x256xf32, #tpu.memory_space<vmem>>, %arg5: memref<8x256xf32, #tpu.memory_space<vmem>>) attributes {dimension_semantics = [#tpu.dimension_semantics<parallel>, #tpu.dimension_semantics<parallel>], iteration_bounds = array<i64: 1, 1>, scalar_prefetch = 0 : i64, scratch_operands = 0 : i64, tpu.core_type = #tpu.core_type<tc>, window_params = [{pipeline_mode = #tpu.pipeline_mode<synchronous>, transform_indices = @transform_0, window_bounds = array<i64: 8, 1>}, {pipeline_mode = #tpu.pipeline_mode<synchronous>, transform_indices = @transform_1, window_bounds = array<i64: 8, 1>}, {transform_indices = @transform_2, window_bounds = array<i64: 8, 256>}, {transform_indices = @transform_3, window_bounds = array<i64: 8, 256>}]} {
    %c8_i32 = arith.constant 8 : i32
    %0 = arith.muli %arg0, %c8_i32 : i32
    %1 = tpu.assume_multiple %0, 8 : i32
    %2 = arith.index_cast %1 : i32 to index
    %c0 = arith.constant 0 : index
    %3 = vector.load %arg2[%2, %c0] : memref<8x1xf32, #tpu.memory_space<vmem>>, vector<8x1xf32>
    %4 = arith.index_cast %1 : i32 to index
    %c0_0 = arith.constant 0 : index
    %5 = vector.load %arg3[%4, %c0_0] : memref<8x1xf32, #tpu.memory_space<vmem>>, vector<8x1xf32>
    %c0_1 = arith.constant 0 : index
    %c0_2 = arith.constant 0 : index
    %6 = vector.load %arg4[%c0_1, %c0_2] : memref<8x256xf32, #tpu.memory_space<vmem>>, vector<8x256xf32>
    %7 = vector.broadcast %3 : vector<8x1xf32> to vector<8x256xf32>
    %8 = arith.mulf %6, %7 : vector<8x256xf32>
    %9 = vector.broadcast %5 : vector<8x1xf32> to vector<8x256xf32>
    %10 = arith.addf %8, %9 : vector<8x256xf32>
    %c0_3 = arith.constant 0 : index
    %c0_4 = arith.constant 0 : index
    %11 = vector.load %arg5[%c0_3, %c0_4] : memref<8x256xf32, #tpu.memory_space<vmem>>, vector<8x256xf32>
    tpu.vector_store %arg5[%c0_3, %c0_4], %10 {strides = array<i32>} : memref<8x256xf32, #tpu.memory_space<vmem>>, vector<8x256xf32>,
    return
  }
  func.func @transform_0(%arg0: i32, %arg1: i32) -> (i32, i32) {
    %c0_i32 = arith.constant 0 : i32
    %c0_i32_0 = arith.constant 0 : i32
    %c0_i32_1 = arith.constant 0 : i32
    return %c0_i32, %c0_i32_0 : i32, i32
  }
  func.func @transform_1(%arg0: i32, %arg1: i32) -> (i32, i32) {
    %c0_i32 = arith.constant 0 : i32
    %c0_i32_0 = arith.constant 0 : i32
    %c0_i32_1 = arith.constant 0 : i32
    return %c0_i32, %c0_i32_0 : i32, i32
  }
  func.func @transform_2(%arg0: i32, %arg1: i32) -> (i32, i32) {
    %c0_i32 = arith.constant 0 : i32
    return %arg0, %arg1 : i32, i32
  }
  func.func @transform_3(%arg0: i32, %arg1: i32) -> (i32, i32) {
    %c0_i32 = arith.constant 0 : i32
    return %arg0, %arg1 : i32, i32
  }
}

</mosaic_0001>

<bundles_post_ra>
// kernel: tpu_custom_call.1
= control target key start
LH: loop header
LB: loop body
LE: loop exit
PB: predicated region body
PF: predicated region fallthrough
CT: control target
= control target key end

     0   :  { %v79_v1 = vmov 0   ;;  %s125_s0 = inlined_call_operand.vmem [shape: f32[8,1], index: 0, kind: input, shape index: {}]   ;;  %s126_s1 = inlined_call_operand.vmem [shape: f32[8,1], index: 1, kind: input, shape index: {}]   ;;  %s127_s2 = inlined_call_operand.vmem [shape: f32[8,256], index: 2, kind: input, shape index: {}]   ;;  %s128_s3 = inlined_call_operand.hbm [shape: f32[8,256], index: 3, kind: output, shape index: {}]  }
   0x1   :  { %v17_v0 = vld [vmem:[%s125_s0] sm:$0xff]  ;;  %54 = vset.pattern.permute.xlu0 %v79_v1 }
   0x2   :  { %8 = vsyncpa [#allocation3], 0  ;;  %24 = vperm.xlu0 %54, %v17_v0   ;;  %v19_v2 = vld [vmem:[%s126_s1] sm:$0xff]  ;;  %v21_v4 = vld [vmem:[%s127_s2 + $0x8] sm:$0xff]  ;;  %s80_s20 = smov [#allocation2]  }
   0x3   :  { %v20_v3 = vld [vmem:[%s127_s2] sm:$0xff]  ;;  %s44_s0 = sshll.u32 %s80_s20, 4  ;;  %s45_s0 = int_to_ptr.vmem [resolvable:$true] %s44_s0 }
   0x4   :  { %s55_s1 = scalar_lea.vmem %s45_s0, 256  ;;  %p60_p1 = scmp.lt.s32.totalorder %s45_s0, %s45_s0 }
   0x5   :  { %p56_p0 = scmp.ne.s32.totalorder %s45_s0, %s55_s1  ;;  %p61_p2 = scmp.lt.s32.totalorder %s55_s1, %s55_s1 }
   0x6   :  { %31 = vperm.xlu0 %54, %v19_v2  }
   0x7   :  { %p62_p3 = por %p61_p2, %p60_p1 }
   0x9   :  { %p63_p4 = pnand %p62_p3, %p56_p0 }
  0x81   :  { %v25_v5 = vpop.permute.xlu0 %24 }
  0x82   :  { %v27_v6 = vmul.f32 %v25_v5, %v20_v3  ;;  %v28_v7 = vmul.f32 %v25_v5, %v21_v4 }
  0x85   :  { %v32_v8 = vpop.permute.xlu0 %31 }
  0x86   :  { %v34_v9 = vadd.f32 %v32_v8, %v27_v6  ;;  %v35_v10 = vadd.f32 %v32_v8, %v28_v7 }
  0x88   :  { %36 = vst [vmem:[#allocation2] sm:$0xff] %v34_v9  ;;  %37 = vst [vmem:[#allocation2 + $0x8] sm:$0xff] %v35_v10 }
  0x89   :  { %66 = shalt.err (!%p63_p4)
}
  0x8a   :  { %s67_s22 = scalar_lea.hbm %s128_s3, 256 }
  0x8b   :  { %p68_p5 = scmp.ne.s32.totalorder %s128_s3, %s67_s22  ;;  %p71_p6 = scmp.lt.u32.totalorder %s67_s22, %s128_s3 }
  0x8d   :  { %p73_p7 = pnand %p71_p6, %p68_p5 }
  0x8f   :  { %76 = shalt.err (!%p73_p7)
}
  0x90   :  { %47 = dma.vmem_to_hbm [thread:$0]  %s45_s0, 256, %s128_s3, [#allocation3]  }
  0x91   :  { %77 = dma.done.wait [#allocation3], 256  }
  0x92   :  { %78 = vsyncadd [#allocation3], 4294967040 }
  0x93   :  { %51 = vsyncpa [#allocation3], 1 }

</bundles_post_ra>
